<compile_context>
chip_gen: v7x
topology: tpu7x:2x2x1
jax: 0.10.0
libtpu: 0.0.40
codegen_flags: <defaults>
</compile_context>

<pallas_src>
import functools
from typing import NamedTuple, Optional

import jax
import jax.numpy as jnp
from jax.experimental import pallas as pl
from jax.experimental.pallas import tpu as pltpu


def _round_up(n: int, m: int) -> int:
    return (n + m - 1) // m * m


# --------------------------------------------------------------------------
# Parameter preparation (run ONCE at load time, not per forward call).
# --------------------------------------------------------------------------
class ExcitationParams(NamedTuple):
    w1t: jax.Array                     # (Cin, S_pad) or (Cin, Cout), matmul dtype
    b1: jax.Array                      # (1, S_pad)   or (1, Cout),   f32
    w2t: Optional[jax.Array] = None    # (S_pad, Cout),               matmul dtype
    b2: Optional[jax.Array] = None     # (1, Cout),                   f32


def prepare_excitation_params(w1, b1, w2=None, b2=None, *,
                              matmul_dtype=jnp.bfloat16) -> ExcitationParams:
    """Weights are in PyTorch nn.Linear layout W[out, in]."""
    w1 = jnp.asarray(w1)
    b1 = jnp.asarray(b1)
    if w2 is None:
        # Linear branch: fc1 maps Cin -> Cout directly; output dim not padded.
        return ExcitationParams(
            w1t=w1.T.astype(matmul_dtype),
            b1=b1.astype(jnp.float32).reshape(1, -1))
    w2 = jnp.asarray(w2)
    b2 = jnp.asarray(b2)
    s = w1.shape[0]
    s_pad = _round_up(s, 128)          # lane-dense intermediate; zero pad is exact
    w1t = jnp.pad(w1.T.astype(matmul_dtype), ((0, 0), (0, s_pad - s)))
    b1p = jnp.pad(b1.astype(jnp.float32), (0, s_pad - s)).reshape(1, s_pad)
    w2t = jnp.pad(w2.T.astype(matmul_dtype), ((0, s_pad - s), (0, 0)))
    b2p = b2.astype(jnp.float32).reshape(1, -1)
    return ExcitationParams(w1t, b1p, w2t, b2p)


# --------------------------------------------------------------------------
# Kernels
# --------------------------------------------------------------------------
def _sigmoid(s, approx):
    if approx:
        # exp and reciprocal both go to the otherwise-idle EUP slot.
        return pl.reciprocal(1.0 + jnp.exp(-s), approx=True)
    return jax.nn.sigmoid(s)


def _kernel_relu(x_ref, w1t_ref, b1_ref, w2t_ref, b2_ref, o_ref, *, approx_sigmoid):
    # Cast x to the matmul dtype in-kernel (no separate HBM pre-pass).
    x = x_ref[...].astype(w1t_ref.dtype)
    h = jnp.dot(x, w1t_ref[...], preferred_element_type=jnp.float32)
    h = jnp.maximum(h + b1_ref[...], 0.0)                 # bias + ReLU in f32
    s = jnp.dot(h.astype(w2t_ref.dtype), w2t_ref[...],
                preferred_element_type=jnp.float32)
    o_ref[...] = _sigmoid(s + b2_ref[...], approx_sigmoid).astype(o_ref.dtype)


def _kernel_linear(x_ref, w1t_ref, b1_ref, o_ref, *, approx_sigmoid):
    x = x_ref[...].astype(w1t_ref.dtype)
    s = jnp.dot(x, w1t_ref[...], preferred_element_type=jnp.float32)
    o_ref[...] = _sigmoid(s + b1_ref[...], approx_sigmoid).astype(o_ref.dtype)


# --------------------------------------------------------------------------
# Forward
# --------------------------------------------------------------------------
@functools.partial(
    jax.jit,
    static_argnames=("out_dtype", "batch_tile", "small_threshold", "approx_sigmoid"))
def excitation_forward(x, params: ExcitationParams, *,
                       out_dtype=jnp.bfloat16, batch_tile=1024,
                       small_threshold=1 << 15, approx_sigmoid=True):
    """x: (B, Cin). Returns the sigmoid gate, shape (B, Cout), dtype out_dtype."""
    B, cin = x.shape
    use_act = params.w2t is not None
    cout = params.w2t.shape[1] if use_act else params.w1t.shape[1]
    s_mid = params.w1t.shape[1]        # S_pad (relu branch) or Cout (linear branch)

    # ---- tiny-problem fast path: pallas_call fixed cost dominates below this
    if B * cout <= small_threshold:
        xm = x.astype(params.w1t.dtype)
        s = jnp.dot(xm, params.w1t, preferred_element_type=jnp.float32) + params.b1
        if use_act:
            s = jnp.maximum(s, 0.0)
            s = jnp.dot(s.astype(params.w2t.dtype), params.w2t,
                        preferred_element_type=jnp.float32) + params.b2
        return jax.nn.sigmoid(s).astype(out_dtype)

    # ---- batch tile: amortize per-step overhead, stay in VMEM budget, and keep
    #      >=2 grid steps when possible so v7x can shard the "parallel" axis.
    x_item = jnp.dtype(x.dtype).itemsize
    md_item = jnp.dtype(params.w1t.dtype).itemsize
    out_item = jnp.dtype(out_dtype).itemsize

    weight_bytes = 2 * (cin * s_mid * md_item + s_mid * 4)       # double-buffered
    if use_act:
        weight_bytes += 2 * (s_mid * cout * md_item + cout * 4)
    per_row = 2 * (cin * x_item + cout * out_item) + 4 * (s_mid + cout)
    budget = 40 << 20                 # headroom under v7x's 64 MiB VMEM
    tb_cap = max(8, (budget - weight_bytes) // max(per_row, 1))

    tb = min(int(batch_tile), int(tb_cap))
    if B > 8:
        tb = min(tb, (B + 1) // 2)    # >=2 grid steps -> both v7x TensorCores busy
    tb = _round_up(max(1, min(tb, B)), 8)

    grid = (pl.cdiv(B, tb),)          # boundary block is masked by Pallas
    vmem_limit = int(min(max(weight_bytes + tb * per_row + (4 << 20), 32 << 20),
                         64 << 20))
    cparams = pltpu.CompilerParams(
        dimension_semantics=("parallel",), vmem_limit_bytes=vmem_limit)

    x_spec = pl.BlockSpec((tb, cin), lambda i: (i, 0))
    out_spec = pl.BlockSpec((tb, cout), lambda i: (i, 0))
    # Constant index map -> fetched once, stays resident in VMEM across steps.
    resident = lambda shape: pl.BlockSpec(shape, lambda i: (0, 0))
    out_shape = jax.ShapeDtypeStruct((B, cout), out_dtype)

    if use_act:
        kernel = functools.partial(_kernel_relu, approx_sigmoid=approx_sigmoid)
        return pl.pallas_call(
            kernel, out_shape=out_shape, grid=grid,
            in_specs=[x_spec,
                      resident((cin, s_mid)), resident((1, s_mid)),
                      resident((s_mid, cout)), resident((1, cout))],
            out_specs=out_spec, compiler_params=cparams,
        )(x, params.w1t, params.b1, params.w2t, params.b2)

    kernel = functools.partial(_kernel_linear, approx_sigmoid=approx_sigmoid)
    return pl.pallas_call(
        kernel, out_shape=out_shape, grid=grid,
        in_specs=[x_spec, resident((cin, cout)), resident((1, cout))],
        out_specs=out_spec, compiler_params=cparams,
    )(x, params.w1t, params.b1)


# --------------------------------------------------------------------------
# Pure-JAX reference (mirrors the PyTorch module in f32).
# --------------------------------------------------------------------------
def _ref_forward(x, w1, b1, w2=None, b2=None, *, use_activation=True):
    s = x @ w1.T + b1
    if use_activation:
        s = jnp.maximum(s, 0.0)
        s = s @ w2.T + b2
    return jax.nn.sigmoid(s)


if __name__ == "__main__":
    batch = 8
    input_channels = 32
    squeeze_channels = 8
    output_channels = 32

    key = jax.random.PRNGKey(0)
    kx, kw1, kb1, kw2, kb2 = jax.random.split(key, 5)

    x = jax.random.normal(kx, (batch, input_channels), dtype=jnp.float32)
    # PyTorch nn.Linear weight layout: (out_features, in_features)
    w1 = jax.random.normal(kw1, (squeeze_channels, input_channels), jnp.float32) * 0.1
    b1 = jax.random.normal(kb1, (squeeze_channels,), jnp.float32) * 0.1
    w2 = jax.random.normal(kw2, (output_channels, squeeze_channels), jnp.float32) * 0.1
    b2 = jax.random.normal(kb2, (output_channels,), jnp.float32) * 0.1

    ref_relu = _ref_forward(x, w1, b1, w2, b2, use_activation=True)

    # ---- ReLU branch, Pallas path (small_threshold=0 forces the kernel) -----
    # Default config: bf16 MXU operands, bf16 gate output, approx sigmoid.
    p_bf16 = prepare_excitation_params(w1, b1, w2, b2)
    out_bf16 = jax.block_until_ready(
        excitation_forward(x, p_bf16, small_threshold=0))
    assert out_bf16.shape == (batch, output_channels)
    assert out_bf16.dtype == jnp.bfloat16
    assert jnp.allclose(out_bf16.astype(jnp.float32), ref_relu, atol=2e-2, rtol=2e-2)

    # f32 operands + f32 output + exact sigmoid: tight semantic check.
    p_f32 = prepare_excitation_params(w1, b1, w2, b2, matmul_dtype=jnp.float32)
    out_f32 = jax.block_until_ready(
        excitation_forward(x, p_f32, out_dtype=jnp.float32,
                           small_threshold=0, approx_sigmoid=False))
    assert jnp.allclose(out_f32, ref_relu, atol=2e-3, rtol=2e-3)

    # ---- Linear branch (activation=None): fc1 (Cin -> Cout) -> sigmoid ------
    w1b = jax.random.normal(kw2, (output_channels, input_channels), jnp.float32) * 0.1
    b1b = jax.random.normal(kb2, (output_channels,), jnp.float32) * 0.1
    ref_lin = _ref_forward(x, w1b, b1b, use_activation=False)
    p_lin = prepare_excitation_params(w1b, b1b, matmul_dtype=jnp.float32)
    out_lin = jax.block_until_ready(
        excitation_forward(x, p_lin, out_dtype=jnp.float32,
                           small_threshold=0, approx_sigmoid=False))
    assert out_lin.shape == (batch, output_channels)
    assert jnp.allclose(out_lin, ref_lin, atol=2e-3, rtol=2e-3)

    # ---- tiny-problem XLA fast path (default threshold) ---------------------
    out_fast = jax.block_until_ready(
        excitation_forward(x, p_f32, out_dtype=jnp.float32))
    assert jnp.allclose(out_fast, ref_relu, atol=2e-3, rtol=2e-3)

    print("KERNEL_OK")
</pallas_src>

<mosaic_0001>
module attributes {stable_mosaic.version = 11 : i64} {
  func.func @_kernel_relu(%arg0: i32, %arg1: memref<8x32xf32, #tpu.memory_space<vmem>>, %arg2: memref<32x128xbf16, #tpu.memory_space<vmem>>, %arg3: memref<1x128xf32, #tpu.memory_space<vmem>>, %arg4: memref<128x32xbf16, #tpu.memory_space<vmem>>, %arg5: memref<1x32xf32, #tpu.memory_space<vmem>>, %arg6: memref<8x32xbf16, #tpu.memory_space<vmem>>) attributes {dimension_semantics = [#tpu.dimension_semantics<parallel>], iteration_bounds = array<i64: 1>, scalar_prefetch = 0 : i64, scratch_operands = 0 : i64, tpu.core_type = #tpu.core_type<tc>, window_params = [{transform_indices = @transform_0, window_bounds = array<i64: 8, 32>}, {pipeline_mode = #tpu.pipeline_mode<synchronous>, transform_indices = @transform_1, window_bounds = array<i64: 32, 128>}, {pipeline_mode = #tpu.pipeline_mode<synchronous>, transform_indices = @transform_2, window_bounds = array<i64: 1, 128>}, {pipeline_mode = #tpu.pipeline_mode<synchronous>, transform_indices = @transform_3, window_bounds = array<i64: 128, 32>}, {pipeline_mode = #tpu.pipeline_mode<synchronous>, transform_indices = @transform_4, window_bounds = array<i64: 1, 32>}, {transform_indices = @transform_5, window_bounds = array<i64: 8, 32>}]} {
    %c0 = arith.constant 0 : index
    %c0_0 = arith.constant 0 : index
    %0 = vector.load %arg1[%c0, %c0_0] : memref<8x32xf32, #tpu.memory_space<vmem>>, vector<8x32xf32>
    %1 = arith.truncf %0 : vector<8x32xf32> to vector<8x32xbf16>
    %c0_1 = arith.constant 0 : index
    %c0_2 = arith.constant 0 : index
    %2 = vector.load %arg2[%c0_1, %c0_2] : memref<32x128xbf16, #tpu.memory_space<vmem>>, vector<32x128xbf16>
    %cst = arith.constant dense<0.000000e+00> : vector<8x128xf32>
    %3 = tpu.matmul %1, %2, %cst {dimension_numbers = #tpu.dot_dimension_numbers<[1], [0], [0], [1], [0, 0, 1, 1], [], []>} : vector<8x32xbf16>, vector<32x128xbf16>, vector<8x128xf32> -> vector<8x128xf32>
    %c0_3 = arith.constant 0 : index
    %c0_4 = arith.constant 0 : index
    %4 = vector.load %arg3[%c0_3, %c0_4] : memref<1x128xf32, #tpu.memory_space<vmem>>, vector<1x128xf32>
    %5 = vector.broadcast %4 : vector<1x128xf32> to vector<8x128xf32>
    %6 = arith.addf %3, %5 : vector<8x128xf32>
    %cst_5 = arith.constant 0.000000e+00 : f32
    %7 = vector.broadcast %cst_5 : f32 to vector<8x128xf32>
    %8 = arith.maximumf %6, %7 : vector<8x128xf32>
    %9 = arith.truncf %8 : vector<8x128xf32> to vector<8x128xbf16>
    %c0_6 = arith.constant 0 : index
    %c0_7 = arith.constant 0 : index
    %10 = vector.load %arg4[%c0_6, %c0_7] : memref<128x32xbf16, #tpu.memory_space<vmem>>, vector<128x32xbf16>
    %cst_8 = arith.constant dense<0.000000e+00> : vector<8x32xf32>
    %11 = tpu.matmul %9, %10, %cst_8 {dimension_numbers = #tpu.dot_dimension_numbers<[1], [0], [0], [1], [0, 0, 1, 1], [], []>} : vector<8x128xbf16>, vector<128x32xbf16>, vector<8x32xf32> -> vector<8x32xf32>
    %c0_9 = arith.constant 0 : index
    %c0_10 = arith.constant 0 : index
    %12 = vector.load %arg5[%c0_9, %c0_10] : memref<1x32xf32, #tpu.memory_space<vmem>>, vector<1x32xf32>
    %13 = vector.broadcast %12 : vector<1x32xf32> to vector<8x32xf32>
    %14 = arith.addf %11, %13 : vector<8x32xf32>
    %cst_11 = arith.constant 0.000000e+00 : f32
    %15 = vector.broadcast %cst_11 : f32 to vector<8x32xf32>
    %16 = arith.subf %15, %14 : vector<8x32xf32>
    %17 = math.exp %16 : vector<8x32xf32>
    %cst_12 = arith.constant 1.000000e+00 : f32
    %18 = vector.broadcast %cst_12 : f32 to vector<8x32xf32>
    %19 = arith.addf %18, %17 : vector<8x32xf32>
    %20 = tpu.reciprocal %19 {approx = true} : vector<8x32xf32> -> vector<8x32xf32>
    %21 = arith.truncf %20 : vector<8x32xf32> to vector<8x32xbf16>
    %c0_13 = arith.constant 0 : index
    %c0_14 = arith.constant 0 : index
    %22 = vector.load %arg6[%c0_13, %c0_14] : memref<8x32xbf16, #tpu.memory_space<vmem>>, vector<8x32xbf16>
    tpu.vector_store %arg6[%c0_13, %c0_14], %21 {strides = array<i32>} : memref<8x32xbf16, #tpu.memory_space<vmem>>, vector<8x32xbf16>,
    return
  }
  func.func @transform_0(%arg0: i32) -> (i32, i32) {
    %c0_i32 = arith.constant 0 : i32
    %c0_i32_0 = arith.constant 0 : i32
    return %arg0, %c0_i32 : i32, i32
  }
  func.func @transform_1(%arg0: i32) -> (i32, i32) {
    %c0_i32 = arith.constant 0 : i32
    %c0_i32_0 = arith.constant 0 : i32
    %c0_i32_1 = arith.constant 0 : i32
    return %c0_i32, %c0_i32_0 : i32, i32
  }
  func.func @transform_2(%arg0: i32) -> (i32, i32) {
    %c0_i32 = arith.constant 0 : i32
    %c0_i32_0 = arith.constant 0 : i32
    %c0_i32_1 = arith.constant 0 : i32
    return %c0_i32, %c0_i32_0 : i32, i32
  }
  func.func @transform_3(%arg0: i32) -> (i32, i32) {
    %c0_i32 = arith.constant 0 : i32
    %c0_i32_0 = arith.constant 0 : i32
    %c0_i32_1 = arith.constant 0 : i32
    return %c0_i32, %c0_i32_0 : i32, i32
  }
  func.func @transform_4(%arg0: i32) -> (i32, i32) {
    %c0_i32 = arith.constant 0 : i32
    %c0_i32_0 = arith.constant 0 : i32
    %c0_i32_1 = arith.constant 0 : i32
    return %c0_i32, %c0_i32_0 : i32, i32
  }
  func.func @transform_5(%arg0: i32) -> (i32, i32) {
    %c0_i32 = arith.constant 0 : i32
    %c0_i32_0 = arith.constant 0 : i32
    return %arg0, %c0_i32 : i32, i32
  }
}

</mosaic_0001>

<bundles_post_ra>
// kernel: excitation_forward.1
= control target key start
LH: loop header
LB: loop body
LE: loop exit
PB: predicated region body
PF: predicated region fallthrough
CT: control target
= control target key end

     0   :  { %v320_v1 = vmov 0.0   ;;  %vm321_vm0 = vmmov 0   ;;  %vm47_vm1 = vcmask 261120   ;;  %s404_s0 = inlined_call_operand.vmem [shape: f32[8,32], index: 0, kind: input, shape index: {}]   ;;  %s405_s1 = inlined_call_operand.vmem [shape: bf16[32,128], index: 1, kind: input, shape index: {}]   ;;  %s406_s2 = inlined_call_operand.vmem [shape: f32[1,128], index: 2, kind: input, shape index: {}]   ;;  %s407_s3 = inlined_call_operand.vmem [shape: bf16[128,32], index: 3, kind: input, shape index: {}]   ;;  %s408_s4 = inlined_call_operand.vmem [shape: f32[1,32], index: 4, kind: input, shape index: {}]   ;;  %s409_s5 = inlined_call_operand.hbm [shape: bf16[8,32], index: 5, kind: output, shape index: {}]  }
   0x1   :  { %v282_v0 = vld [vmem:[%s405_s1] sm:$0xff]   ;;  %251 = vmatprep.subr.bf16.mxu0 %v320_v1  ;;  %v283_v2 = vld [vmem:[%s405_s1 + $0x8] sm:$0xff]   ;;  %259 = vmatprep.subr.bf16.mxu1 %v320_v1  ;;  %v286_v7 = vld [vmem:[%s407_s3 + $0x10] sm:$0xff]  }
   0x2   :  { %252 = vmatpush3.bf16.msra.mxu0 %v282_v0  ;;  %255 = vmatprep.mubr.msk.bf16.mxu0 %vm321_vm0, %v320_v1  ;;  %v22_v3 = vld [vmem:[%s404_s0] sm:$0xff]  ;;  %v285_v6 = vld [vmem:[%s407_s3 + $0x8] sm:$0xff]  }
   0x3   :  { %253 = vmatprep.subr.bf16.mxu0 %v320_v1  ;;  %v284_v4 = vld [vmem:[%s407_s3] sm:$0xff]   ;;  %275 = vmatprep.mubr.msk.bf16.mxu1 %vm321_vm0, %v320_v1  ;;  %v23_v5 = vpack.c.bf16 %v22_v3, %v22_v3 }
   0x4   :  { %260 = vmatpush3.bf16.msra.mxu1 %v284_v4 }
   0x5   :  { %261 = vmatprep.subr.bf16.mxu1 %v320_v1 }
   0x6   :  { %254 = vmatpush3.bf16.msra.mxu0 %v283_v2 }
   0x8   :  { %262 = vmatpush3.bf16.msra.mxu1 %v285_v6 }
   0x9   :  { %256 = vmatmul.mubr.msk.bf16.vlgmr.msra.gmra.mrb[0].mxu0 %vm47_vm1, %v23_v5  ;;  %263 = vmatprep.subr.bf16.mxu1 %v320_v1 }
   0xa   :  { %10 = vsyncpa [#allocation3], 0  ;;  %v287_v8 = vld [vmem:[%s407_s3 + $0x18] sm:$0xff]   ;;  %v288_v9 = vld [vmem:[%s407_s3 + $0x20] sm:$0xff]   ;;  %vm210_vm2 = vcmask 257024  }
   0xb   :  { %v289_v10 = vld [vmem:[%s407_s3 + $0x28] sm:$0xff]   ;;  %v290_v11 = vld [vmem:[%s407_s3 + $0x30] sm:$0xff]   ;;  %v291_v12 = vld [vmem:[%s407_s3 + $0x38] sm:$0xff]  }
   0xc   :  { %264 = vmatpush3.bf16.msra.mxu1 %v286_v7  ;;  %v226_v13 = vld [vmem:[%s406_s2] ss:$0 sm:$0xff]  ;;  %s322_s2 = smov [#allocation2]  }
   0xd   :  { %265 = vmatprep.subr.bf16.mxu1 %v320_v1  ;;  %v230_v21 = vld [vmem:[%s408_s4] ss:$0 sm:$0xff]  ;;  %s218_s3 = sshll.u32 %s322_s2, 4  ;;  %s219_s3 = int_to_ptr.vmem [resolvable:$true] %s218_s3 }
   0xe   :  { %s296_s17 = scalar_lea.vmem %s219_s3, 64  ;;  %p301_p1 = scmp.lt.s32.totalorder %s219_s3, %s219_s3 }
   0xf   :  { %p297_p0 = scmp.ne.s32.totalorder %s219_s3, %s296_s17  ;;  %p302_p2 = scmp.lt.s32.totalorder %s296_s17, %s296_s17 }
  0x10   :  { %266 = vmatpush3.bf16.msra.mxu1 %v287_v8 }
  0x11   :  { %267 = vmatprep.subr.bf16.mxu1 %v320_v1  ;;  %p303_p3 = por %p302_p2, %p301_p1 }
  0x13   :  { %p304_p4 = pnand %p303_p3, %p297_p0 }
  0x14   :  { %268 = vmatpush3.bf16.msra.mxu1 %v288_v9 }
  0x15   :  { %269 = vmatprep.subr.bf16.mxu1 %v320_v1 }
  0x18   :  { %270 = vmatpush3.bf16.msra.mxu1 %v289_v10 }
  0x19   :  { %271 = vmatprep.subr.bf16.mxu1 %v320_v1 }
  0x1c   :  { %272 = vmatpush3.bf16.msra.mxu1 %v290_v11 }
  0x1d   :  { %273 = vmatprep.subr.bf16.mxu1 %v320_v1 }
  0x20   :  { %274 = vmatpush3.bf16.msra.mxu1 %v291_v12 }
  0xdc   :  { %v85_v14 = vpop.f32.mrb[0].mxu0 }
  0xdd   :  { %v86_v15 = vadd.f32 %v226_v13, %v85_v14  ;;  %v257_v16 = vpop.f32.mrb[1].mxu0 }
  0xde   :  { %v88_v17 = vpop.f32.mrb[2].mxu0 }
  0xdf   :  { %v91_v18 = vmax.f32 %v86_v15, 0.0  ;;  %v258_v19 = vpop.f32.mrb[3].mxu0 }
  0xe1   :  { %v92_v20 = vpack.c.bf16 %v91_v18, %v91_v18 }
  0xe3   :  { %276 = vmatmul.mubr.bf16.vlgmr.msra.gmra.mrb[0].mxu1 %v92_v20 }
 0x1b6   :  { %v198_v22 = vpop.f32.mrb[0].mxu1 }
 0x1b7   :  { %v199_v23 = vadd.f32 %v230_v21, %v198_v22  ;;  %v277_v24 = vpop.f32.mrb[1].mxu1 }
 0x1b8   :  { %v201_v25 = vpop.f32.mrb[2].mxu1 }
 0x1b9   :  { %v204_v26 = vsub.f32 0.0, %v199_v23  ;;  %v278_v27 = vpop.f32.mrb[3].mxu1 }
 0x1bb   :  { %v205_v28 = vmul.f32 1.442695, %v204_v26 }
 0x1bd   :  { %292 = vpow2.f32 %v205_v28 }
 0x1c7   :  { %v293_v29 = vpop.eup %292 }
 0x1c8   :  { %v207_v30 = vadd.f32 1.0, %v293_v29 }
 0x1ca   :  { %294 = vrcp.f32 %v207_v30 }
 0x1d4   :  { %v295_v31 = vpop.eup %294 }
 0x1d5   :  { %v209_v32 = vpack.c.bf16 %v295_v31, %v295_v31 }
 0x1d7   :  { %211 = vst.msk [vmem:[#allocation2] sm:$0xf] %vm210_vm2, %v209_v32 }
 0x1d8   :  { %307 = shalt.err (!%p304_p4)
}
 0x1d9   :  { %s308_s19 = scalar_lea.hbm %s409_s5, 64 }
 0x1da   :  { %p309_p5 = scmp.ne.s32.totalorder %s409_s5, %s308_s19  ;;  %p312_p6 = scmp.lt.u32.totalorder %s308_s19, %s409_s5 }
 0x1dc   :  { %p314_p7 = pnand %p312_p6, %p309_p5 }
 0x1de   :  { %317 = shalt.err (!%p314_p7)
}
 0x1df   :  { %221 = dma.vmem_to_hbm [thread:$0]  %s219_s3, 64, %s409_s5, [#allocation3]  }
 0x1e0   :  { %318 = dma.done.wait [#allocation3], 64  }
 0x1e1   :  { %319 = vsyncadd [#allocation3], 4294967232 }
 0x1e2   :  { %225 = vsyncpa [#allocation3], 1 }

</bundles_post_ra>
